<compile_context>
chip_gen: v6e
topology: v6e:2x2x1
jax: 0.10.0
libtpu: 0.0.40
codegen_flags: <defaults>
</compile_context>

<pallas_src>
import math

import jax
import jax.numpy as jnp
from jax.experimental import pallas as pl
from jax.experimental.pallas import tpu as pltpu


def _round_up(x, m):
    return ((x + m - 1) // m) * m


# ---------------------------------------------------------------------------
# Kernels
# ---------------------------------------------------------------------------
def _ffn_kernel_acc(x_ref, w13_ref, w2_ref, o_ref, acc_ref):
    """One (row-tile, hidden-tile) step; hidden dim tiled via grid axis 1.

    x_ref  : (tm, dim)    bf16 VMEM
    w13_ref: (dim, 2*th)  bf16 VMEM  ([w1 | w3] columns of this hidden tile)
    w2_ref : (th, dim)    bf16 VMEM
    o_ref  : (tm, dim)    VMEM (resident across the hidden axis)
    acc_ref: (tm, dim)    f32 VMEM scratch accumulator
    """
    j = pl.program_id(1)

    @pl.when(j == 0)
    def _():
        acc_ref[...] = jnp.zeros_like(acc_ref)

    x = x_ref[...]
    # Fused gate/up projection: one MXU dot, f32 accumulation.
    h = jnp.dot(x, w13_ref[...], preferred_element_type=jnp.float32)
    th = h.shape[1] // 2
    h1 = h[:, :th]   # gate (f32)
    h3 = h[:, th:]   # up   (f32)

    # SiLU(gate) * up in f32; divide via EUP approximate reciprocal.
    g = h1 * pl.reciprocal(1.0 + jnp.exp(-h1), approx=True) * h3

    acc_ref[...] += jnp.dot(g.astype(w2_ref.dtype), w2_ref[...],
                            preferred_element_type=jnp.float32)

    @pl.when(j == pl.num_programs(1) - 1)
    def _():
        o_ref[...] = acc_ref[...].astype(o_ref.dtype)


def _ffn_kernel_single(x_ref, w13_ref, w2_ref, o_ref):
    """Single-hidden-tile fast path: no accumulator scratch, direct store."""
    x = x_ref[...]
    h = jnp.dot(x, w13_ref[...], preferred_element_type=jnp.float32)
    th = h.shape[1] // 2
    h1 = h[:, :th]
    h3 = h[:, th:]
    g = h1 * pl.reciprocal(1.0 + jnp.exp(-h1), approx=True) * h3
    o_ref[...] = jnp.dot(g.astype(w2_ref.dtype), w2_ref[...],
                         preferred_element_type=jnp.float32).astype(o_ref.dtype)


# ---------------------------------------------------------------------------
# One-time weight packing (do this at weight-load time, NOT per forward call)
# ---------------------------------------------------------------------------
def pack_ffn_weights(w1t, w3t, w2t, *, th_target=512,
                     compute_dtype=jnp.bfloat16):
    """Pack SwiGLU weights for the Pallas kernel.

    w1t : (dim, hidden)   transposed nn.Linear weight of w1
    w3t : (dim, hidden)   transposed nn.Linear weight of w3
    w2t : (hidden, dim)   transposed nn.Linear weight of w2

    Returns (w13, w2) with
      w13 : (n_ht, dim, 2*th)  bf16, columns laid out [w1 tile | w3 tile]
      w2  : (n_ht*th, dim)     bf16, hidden rows zero-padded to n_ht*th
    """
    dim, hidden = w1t.shape
    # Lane-aligned hidden tile; zero-pad hidden up to a multiple of it (exact).
    th = min(th_target, _round_up(hidden, 128))
    hidden_pad = _round_up(hidden, th)
    if hidden_pad != hidden:
        pad = hidden_pad - hidden
        w1t = jnp.pad(w1t, ((0, 0), (0, pad)))
        w3t = jnp.pad(w3t, ((0, 0), (0, pad)))
        w2t = jnp.pad(w2t, ((0, pad), (0, 0)))
    n_ht = hidden_pad // th
    w1r = w1t.reshape(dim, n_ht, th)
    w3r = w3t.reshape(dim, n_ht, th)
    w13 = jnp.transpose(jnp.concatenate([w1r, w3r], axis=-1), (1, 0, 2))
    return w13.astype(compute_dtype), w2t.astype(compute_dtype)


# ---------------------------------------------------------------------------
# VMEM budget
# ---------------------------------------------------------------------------
_VMEM_CAP_CACHE = [None]


def _vmem_capacity_bytes():
    if _VMEM_CAP_CACHE[0] is None:
        cap = None
        try:
            info = pltpu.get_tpu_info()
            cap = getattr(info, "vmem_capacity_bytes", None)
        except Exception:
            cap = None
        _VMEM_CAP_CACHE[0] = int(cap) if cap else (64 << 20)  # assume v7x if unknown
    return _VMEM_CAP_CACHE[0]


def _vmem_limit_bytes(tm, dim, th, n_ht, out_itemsize, compute_itemsize=2):
    c = compute_itemsize
    need = 0
    need += 2 * tm * dim * c               # x block, double-buffered
    need += 2 * dim * (2 * th) * c         # w13 block, double-buffered
    need += 2 * th * dim * c               # w2 block, double-buffered
    need += 2 * tm * dim * out_itemsize    # out block, double-buffered
    if n_ht > 1:
        need += tm * dim * 4               # f32 accumulator scratch
    # In-kernel f32 temporaries (h, g) + compiler slack.
    need += tm * (2 * th) * 4 + tm * th * 4 + (8 << 20)
    need = max(need, 16 << 20)
    cap = _vmem_capacity_bytes()
    return int(min(need, cap - (8 << 20)))  # always leave physical headroom


# ---------------------------------------------------------------------------
# Hot-path wrapper
# ---------------------------------------------------------------------------
def feed_forward_pallas(x, w13, w2, *, tm=512, out_dtype=None):
    """SwiGLU FFN: w2( silu(x @ w1) * (x @ w3) ) on pre-packed weights.

    x   : (B, S, dim) activations (any float dtype; bf16 preferred)
    w13 : (n_ht, dim, 2*th) pre-packed gate/up weights (pack_ffn_weights)
    w2  : (n_ht*th, dim)    pre-packed down projection
    """
    B, S, dim = x.shape
    n_ht, dim_w, two_th = w13.shape
    assert dim_w == dim, "packed weights do not match activation dim"
    th = two_th // 2
    assert w2.shape == (n_ht * th, dim)

    compute_dtype = w13.dtype
    if out_dtype is None:
        out_dtype = compute_dtype
    M = B * S

    # Clamp the row tile for small M (decode) while staying MXU-friendly.
    tm_eff = min(tm, _round_up(M, 16))
    if tm_eff >= 128:
        tm_eff = _round_up(tm_eff, 128)
    tm = max(16, (tm_eff // 16) * 16)

    M_pad = pl.cdiv(M, tm) * tm
    x2d = x.reshape(M, dim)
    if x2d.dtype != compute_dtype:
        x2d = x2d.astype(compute_dtype)
    if M_pad != M:
        x2d = jnp.pad(x2d, ((0, M_pad - M), (0, 0)))

    vmem_limit = _vmem_limit_bytes(tm, dim, th, n_ht,
                                   jnp.dtype(out_dtype).itemsize)

    if n_ht == 1:
        grid = (M_pad // tm,)
        in_specs = [
            pl.BlockSpec((tm, dim), lambda i: (i, 0)),
            pl.BlockSpec((None, dim, 2 * th), lambda i: (0, 0, 0)),
            pl.BlockSpec((th, dim), lambda i: (0, 0)),
        ]
        out_specs = pl.BlockSpec((tm, dim), lambda i: (i, 0))
        scratch = []
        kernel = _ffn_kernel_single
        dims = ("parallel",)
    else:
        grid = (M_pad // tm, n_ht)
        in_specs = [
            pl.BlockSpec((tm, dim), lambda i, j: (i, 0)),
            pl.BlockSpec((None, dim, 2 * th), lambda i, j: (j, 0, 0)),
            pl.BlockSpec((th, dim), lambda i, j: (j, 0)),
        ]
        out_specs = pl.BlockSpec((tm, dim), lambda i, j: (i, 0))
        scratch = [pltpu.VMEM((tm, dim), jnp.float32)]
        kernel = _ffn_kernel_acc
        dims = ("parallel", "arbitrary")

    out2d = pl.pallas_call(
        kernel,
        out_shape=jax.ShapeDtypeStruct((M_pad, dim), out_dtype),
        grid_spec=pltpu.PrefetchScalarGridSpec(
            num_scalar_prefetch=0,
            grid=grid,
            in_specs=in_specs,
            out_specs=out_specs,
            scratch_shapes=scratch,
        ),
        compiler_params=pltpu.CompilerParams(
            dimension_semantics=dims,
            vmem_limit_bytes=vmem_limit,
        ),
    )(x2d, w13, w2)

    return out2d[:M].reshape(B, S, dim)


def _compute_hidden_dim(dim, hidden_dim, multiple_of, ffn_dim_multiplier):
    hidden_dim = int(2 * hidden_dim / 3)
    if ffn_dim_multiplier is not None:
        hidden_dim = int(ffn_dim_multiplier * hidden_dim)
    hidden_dim = multiple_of * ((hidden_dim + multiple_of - 1) // multiple_of)
    return hidden_dim


if __name__ == "__main__":
    # Small but lane-aligned FeedForward config (hidden -> 384).
    dim = 128
    hidden_dim_arg = 4 * dim
    multiple_of = 128
    ffn_dim_multiplier = None
    hidden = _compute_hidden_dim(dim, hidden_dim_arg, multiple_of,
                                 ffn_dim_multiplier)   # = 384

    B, S = 2, 8

    key = jax.random.PRNGKey(0)
    kx, k1, k2, k3 = jax.random.split(key, 4)

    x_f32 = jax.random.normal(kx, (B, S, dim), dtype=jnp.float32)

    def init_linear(k, fan_in, fan_out):
        bound = 1.0 / math.sqrt(fan_in)
        return jax.random.uniform(k, (fan_in, fan_out), jnp.float32,
                                  minval=-bound, maxval=bound)

    w1t = init_linear(k1, dim, hidden)     # w1: Linear(dim -> hidden)
    w3t = init_linear(k3, dim, hidden)     # w3: Linear(dim -> hidden)
    w2t = init_linear(k2, hidden, dim)     # w2: Linear(hidden -> dim)

    # Reference mirroring the kernel's bf16-operand / f32-accumulate math.
    def ref_bf16(xv):
        rd = lambda a: a.astype(jnp.bfloat16).astype(jnp.float32)
        xb = rd(xv)
        h1 = xb @ rd(w1t)
        h3 = xb @ rd(w3t)
        g = h1 * jax.nn.sigmoid(h1) * h3
        return rd(g) @ rd(w2t)

    expected = ref_bf16(x_f32)

    # Activations handed to the kernel already in bf16 (as a caller would).
    x_bf16 = x_f32.astype(jnp.bfloat16)
    ff = jax.jit(feed_forward_pallas)

    # 1) Single hidden tile (n_ht == 1): fast path, no accumulator scratch.
    w13_a, w2_a = pack_ffn_weights(w1t, w3t, w2t, th_target=512)
    out_a = jax.block_until_ready(ff(x_bf16, w13_a, w2_a))
    assert out_a.shape == (B, S, dim)

    # 2) Tiled hidden dim (n_ht == 3): accumulator path.
    w13_b, w2_b = pack_ffn_weights(w1t, w3t, w2t, th_target=128)
    out_b = jax.block_until_ready(ff(x_bf16, w13_b, w2_b))
    assert out_b.shape == (B, S, dim)

    for name, out in (("single-tile", out_a), ("tiled", out_b)):
        got = out.astype(jnp.float32)
        max_err = float(jnp.max(jnp.abs(got - expected)))
        assert jnp.allclose(got, expected, atol=3e-2, rtol=3e-2), \
            f"{name} mismatch vs reference, max abs err={max_err}"

    print("KERNEL_OK")
</pallas_src>

<mosaic_0001>
module attributes {stable_mosaic.version = 11 : i64} {
  func.func @_ffn_kernel_single(%arg0: i32, %arg1: memref<16x128xbf16, #tpu.memory_space<vmem>>, %arg2: memref<1x128x768xbf16, #tpu.memory_space<vmem>>, %arg3: memref<384x128xbf16, #tpu.memory_space<vmem>>, %arg4: memref<16x128xbf16, #tpu.memory_space<vmem>>) attributes {dimension_semantics = [#tpu.dimension_semantics<parallel>], iteration_bounds = array<i64: 1>, scalar_prefetch = 0 : i64, scratch_operands = 0 : i64, tpu.core_type = #tpu.core_type<tc>, window_params = [{transform_indices = @transform_0, window_bounds = array<i64: 16, 128>}, {pipeline_mode = #tpu.pipeline_mode<synchronous>, transform_indices = @transform_1, window_bounds = array<i64: 1, 128, 768>}, {pipeline_mode = #tpu.pipeline_mode<synchronous>, transform_indices = @transform_2, window_bounds = array<i64: 384, 128>}, {transform_indices = @transform_3, window_bounds = array<i64: 16, 128>}]} {
    %c0 = arith.constant 0 : index
    %c0_0 = arith.constant 0 : index
    %0 = vector.load %arg1[%c0, %c0_0] : memref<16x128xbf16, #tpu.memory_space<vmem>>, vector<16x128xbf16>
    %c0_1 = arith.constant 0 : index
    %c0_2 = arith.constant 0 : index
    %c0_3 = arith.constant 0 : index
    %1 = vector.load %arg2[%c0_1, %c0_2, %c0_3] : memref<1x128x768xbf16, #tpu.memory_space<vmem>>, vector<1x128x768xbf16>
    %2 = vector.shape_cast %1 : vector<1x128x768xbf16> to vector<128x768xbf16>
    %cst = arith.constant dense<0.000000e+00> : vector<16x768xf32>
    %3 = tpu.matmul %0, %2, %cst {dimension_numbers = #tpu.dot_dimension_numbers<[1], [0], [0], [1], [0, 0, 1, 1], [], []>} : vector<16x128xbf16>, vector<128x768xbf16>, vector<16x768xf32> -> vector<16x768xf32>
    %4 = vector.extract_strided_slice %3 {offsets = [0, 0], sizes = [16, 384], strides = [1, 1]} : vector<16x768xf32> to vector<16x384xf32>
    %5 = vector.extract_strided_slice %3 {offsets = [0, 384], sizes = [16, 384], strides = [1, 1]} : vector<16x768xf32> to vector<16x384xf32>
    %cst_4 = arith.constant 0.000000e+00 : f32
    %6 = vector.broadcast %cst_4 : f32 to vector<16x384xf32>
    %7 = arith.subf %6, %4 : vector<16x384xf32>
    %8 = math.exp %7 : vector<16x384xf32>
    %cst_5 = arith.constant 1.000000e+00 : f32
    %9 = vector.broadcast %cst_5 : f32 to vector<16x384xf32>
    %10 = arith.addf %9, %8 : vector<16x384xf32>
    %11 = tpu.reciprocal %10 {approx = true} : vector<16x384xf32> -> vector<16x384xf32>
    %12 = arith.mulf %4, %11 : vector<16x384xf32>
    %13 = arith.mulf %12, %5 : vector<16x384xf32>
    %14 = arith.truncf %13 : vector<16x384xf32> to vector<16x384xbf16>
    %c0_6 = arith.constant 0 : index
    %c0_7 = arith.constant 0 : index
    %15 = vector.load %arg3[%c0_6, %c0_7] : memref<384x128xbf16, #tpu.memory_space<vmem>>, vector<384x128xbf16>
    %cst_8 = arith.constant dense<0.000000e+00> : vector<16x128xf32>
    %16 = tpu.matmul %14, %15, %cst_8 {dimension_numbers = #tpu.dot_dimension_numbers<[1], [0], [0], [1], [0, 0, 1, 1], [], []>} : vector<16x384xbf16>, vector<384x128xbf16>, vector<16x128xf32> -> vector<16x128xf32>
    %17 = arith.truncf %16 : vector<16x128xf32> to vector<16x128xbf16>
    %c0_9 = arith.constant 0 : index
    %c0_10 = arith.constant 0 : index
    %18 = vector.load %arg4[%c0_9, %c0_10] : memref<16x128xbf16, #tpu.memory_space<vmem>>, vector<16x128xbf16>
    tpu.vector_store %arg4[%c0_9, %c0_10], %17 {strides = array<i32>} : memref<16x128xbf16, #tpu.memory_space<vmem>>, vector<16x128xbf16>,
    return
  }
  func.func @transform_0(%arg0: i32) -> (i32, i32) {
    %c0_i32 = arith.constant 0 : i32
    %c0_i32_0 = arith.constant 0 : i32
    return %arg0, %c0_i32 : i32, i32
  }
  func.func @transform_1(%arg0: i32) -> (i32, i32, i32) {
    %c0_i32 = arith.constant 0 : i32
    %c0_i32_0 = arith.constant 0 : i32
    %c0_i32_1 = arith.constant 0 : i32
    %c0_i32_2 = arith.constant 0 : i32
    return %c0_i32, %c0_i32_0, %c0_i32_1 : i32, i32, i32
  }
  func.func @transform_2(%arg0: i32) -> (i32, i32) {
    %c0_i32 = arith.constant 0 : i32
    %c0_i32_0 = arith.constant 0 : i32
    %c0_i32_1 = arith.constant 0 : i32
    return %c0_i32, %c0_i32_0 : i32, i32
  }
  func.func @transform_3(%arg0: i32) -> (i32, i32) {
    %c0_i32 = arith.constant 0 : i32
    %c0_i32_0 = arith.constant 0 : i32
    return %arg0, %c0_i32 : i32, i32
  }
}

</mosaic_0001>

<bundles_post_ra>
// kernel: feed_forward_pallas.1
= control target key start
LH: loop header
LB: loop body
LE: loop exit
PB: predicated region body
PF: predicated region fallthrough
CT: control target
= control target key end

     0   :  { %8 = vsyncpa [#allocation3], 0  ;;  %s1235_s0 = inlined_call_operand.hbm [shape: bf16[16,128], index: 0, kind: input, shape index: {}]   ;;  %s1236_s1 = inlined_call_operand.hbm [shape: bf16[1,128,768], index: 1, kind: input, shape index: {}]   ;;  %s1237_s2 = inlined_call_operand.hbm [shape: bf16[384,128], index: 2, kind: input, shape index: {}]   ;;  %s1238_s3 = inlined_call_operand.hbm [shape: bf16[16,128], index: 3, kind: output, shape index: {}]  }
   0x1   :  { %9 = vsyncpa [#allocation6], 0 }
   0x2   :  { %10 = vsyncpa [#allocation4], 0  ;;  %s1180_s12 = smov [#allocation5]  }
   0x3   :  { %s28_s13 = sshll.u32 %s1180_s12, 4  ;;  %s29_s13 = int_to_ptr.vmem [resolvable:$true] %s28_s13 }
   0x4   :  { %s1102_s14 = scalar_lea.vmem %s29_s13, 6144  ;;  %p1107_p1 = scmp.lt.s32.totalorder %s29_s13, %s29_s13 }
   0x5   :  { %p1103_p0 = scmp.ne.s32.totalorder %s29_s13, %s1102_s14  ;;  %p1108_p2 = scmp.lt.s32.totalorder %s1102_s14, %s1102_s14 }
   0x7   :  { %p1109_p3 = por %p1108_p2, %p1107_p1 }
   0x9   :  { %p1110_p4 = pnand %p1109_p3, %p1103_p0 }
   0xb   :  { %1113 = shalt.err (!%p1110_p4)
}
   0xc   :  { %s1181_s15 = smov 384   ;;  %s1182_s16 = smov 24  }
   0xd   :  { %34 = dma.hbm_to_vmem [thread:$0]  %s1236_s1, 6144, %s29_s13, [#allocation6], %s1181_s15, %s1181_s15, %s1182_s16  }
   0xe   :  { %s1183_s19 = smov [#allocation2]  }
   0xf   :  { %s16_s20 = sshll.u32 %s1183_s19, 4  ;;  %s17_s20 = int_to_ptr.vmem [resolvable:$true] %s16_s20 }
  0x10   :  { %s1122_s21 = scalar_lea.vmem %s17_s20, 128  ;;  %p1127_p6 = scmp.lt.s32.totalorder %s17_s20, %s17_s20 }
  0x11   :  { %p1123_p5 = scmp.ne.s32.totalorder %s17_s20, %s1122_s21  ;;  %p1128_p7 = scmp.lt.s32.totalorder %s1122_s21, %s1122_s21 }
  0x13   :  { %p1129_p8 = por %p1128_p7, %p1127_p6 }
  0x15   :  { %p1130_p9 = pnand %p1129_p8, %p1123_p5 }
  0x17   :  { %1133 = shalt.err (!%p1130_p9)
}
  0x18   :  { %s1184_s22 = smov 64   ;;  %s1185_s23 = smov 4  }
  0x19   :  { %22 = dma.hbm_to_vmem [thread:$0]  %s1235_s0, 128, %s17_s20, [#allocation3], %s1184_s22, %s1184_s22, %s1185_s23  }
  0x1a   :  { %s1186_s1 = smov [#allocation7]  }
  0x1b   :  { %s40_s26 = sshll.u32 %s1186_s1, 4  ;;  %s41_s26 = int_to_ptr.vmem [resolvable:$true] %s40_s26 }
  0x1c   :  { %s1142_s27 = scalar_lea.vmem %s41_s26, 3072  ;;  %p1147_p11 = scmp.lt.s32.totalorder %s41_s26, %s41_s26 }
  0x1d   :  { %p1143_p10 = scmp.ne.s32.totalorder %s41_s26, %s1142_s27  ;;  %p1148_p12 = scmp.lt.s32.totalorder %s1142_s27, %s1142_s27 }
  0x1f   :  { %p1149_p13 = por %p1148_p12, %p1147_p11 }
  0x21   :  { %p1150_p0 = pnand %p1149_p13, %p1143_p10 }
  0x23   :  { %1153 = shalt.err (!%p1150_p0)
}
  0x24   :  { %46 = dma.hbm_to_vmem [thread:$0]  %s1237_s2, 3072, %s41_s26, [#allocation6], %s1184_s22, %s1184_s22, %s1185_s23  }
  0x25   :  { %1174 = dma.done.wait [#allocation3], 128  }
  0x26   :  { %1175 = vsyncadd [#allocation3], 4294967168 }
  0x27   :  { %1176 = dma.done.wait [#allocation6], 9216  }
  0x28   :  { %1177 = vsyncadd [#allocation6], 4294958080  ;;  %v1187_v0 = vmov 0   ;;  %v973_v1 = vld [vmem:[#allocation5 + $0x154] ss:$24 sps:$4 sm:$0xff]   ;;  %v1021_v34 = vld [vmem:[#allocation2] sm:$0xff]  }
  0x29   :  { %385 = vmatprep.mubr.bf16.mxu0 %v1187_v0  ;;  %428 = vmatprep.mubr.bf16.mxu1 %v1187_v0  ;;  %v975_v2 = vld [vmem:[#allocation5 + $0x15c] ss:$24 sps:$4 sm:$0xff]   ;;  %v977_v3 = vld [vmem:[#allocation5 + $0x150] ss:$24 sps:$4 sm:$0xff]   ;;  %v981_v6 = vld [vmem:[#allocation5 + $0x12c] ss:$24 sps:$4 sm:$0xff]  }
  0x2a   :  { %353 = vmatprep.subr.bf16.mxu0 %v973_v1  ;;  %v978_v4 = vld [vmem:[#allocation5 + $0x158] ss:$24 sps:$4 sm:$0xff]   ;;  %396 = vmatprep.subr.bf16.mxu1 %v975_v2  ;;  %v979_v5 = vld [vmem:[#allocation5 + $0x124] ss:$24 sps:$4 sm:$0xff]   ;;  %v984_v8 = vld [vmem:[#allocation5 + $0x128] ss:$24 sps:$4 sm:$0xff]  }
  0x2b   :  { %354 = vmatpush1.bf16.msra.mxu0 %v977_v3  ;;  %397 = vmatpush1.bf16.msra.mxu1 %v978_v4  ;;  %v983_v7 = vld [vmem:[#allocation5 + $0x120] ss:$24 sps:$4 sm:$0xff]   ;;  %v985_v9 = vld [vmem:[#allocation5 + $0xf4] ss:$24 sps:$4 sm:$0xff]   ;;  %v989_v11 = vld [vmem:[#allocation5 + $0xf0] ss:$24 sps:$4 sm:$0xff]  }
  0x2c   :  { %355 = vmatprep.subr.bf16.mxu0 %v979_v5  ;;  %398 = vmatprep.subr.bf16.mxu1 %v981_v6  ;;  %v987_v10 = vld [vmem:[#allocation5 + $0xfc] ss:$24 sps:$4 sm:$0xff]   ;;  %v990_v12 = vld [vmem:[#allocation5 + $0xf8] ss:$24 sps:$4 sm:$0xff]   ;;  %v993_v14 = vld [vmem:[#allocation5 + $0xcc] ss:$24 sps:$4 sm:$0xff]  }
  0x2d   :  { %v991_v13 = vld [vmem:[#allocation5 + $0xc4] ss:$24 sps:$4 sm:$0xff]   ;;  %v995_v15 = vld [vmem:[#allocation5 + $0xc0] ss:$24 sps:$4 sm:$0xff]   ;;  %v997_v17 = vld [vmem:[#allocation5 + $0x94] ss:$24 sps:$4 sm:$0xff]  }
  0x2e   :  { %v996_v16 = vld [vmem:[#allocation5 + $0xc8] ss:$24 sps:$4 sm:$0xff]   ;;  %v999_v18 = vld [vmem:[#allocation5 + $0x9c] ss:$24 sps:$4 sm:$0xff]   ;;  %v1002_v20 = vld [vmem:[#allocation5 + $0x98] ss:$24 sps:$4 sm:$0xff]  }
  0x2f   :  { %356 = vmatpush1.bf16.msra.mxu0 %v983_v7  ;;  %399 = vmatpush1.bf16.msra.mxu1 %v984_v8  ;;  %v1001_v19 = vld [vmem:[#allocation5 + $0x90] ss:$24 sps:$4 sm:$0xff]   ;;  %v1003_v21 = vld [vmem:[#allocation5 + $0x64] ss:$24 sps:$4 sm:$0xff]   ;;  %v1007_v23 = vld [vmem:[#allocation5 + $0x60] ss:$24 sps:$4 sm:$0xff]  }
  0x30   :  { %357 = vmatprep.subr.bf16.mxu0 %v985_v9  ;;  %400 = vmatprep.subr.bf16.mxu1 %v987_v10  ;;  %v1005_v22 = vld [vmem:[#allocation5 + $0x6c] ss:$24 sps:$4 sm:$0xff]   ;;  %v1008_v24 = vld [vmem:[#allocation5 + $0x68] ss:$24 sps:$4 sm:$0xff]   ;;  %v1011_v26 = vld [vmem:[#allocation5 + $0x3c] ss:$24 sps:$4 sm:$0xff]  }
  0x31   :  { %v1009_v25 = vld [vmem:[#allocation5 + $0x34] ss:$24 sps:$4 sm:$0xff]   ;;  %v1013_v27 = vld [vmem:[#allocation5 + $0x30] ss:$24 sps:$4 sm:$0xff]   ;;  %v1015_v29 = vld [vmem:[#allocation5 + $0x4] ss:$24 sps:$4 sm:$0xff]  }
  0x32   :  { %v1014_v28 = vld [vmem:[#allocation5 + $0x38] ss:$24 sps:$4 sm:$0xff]   ;;  %v1017_v30 = vld [vmem:[#allocation5 + $0xc] ss:$24 sps:$4 sm:$0xff]   ;;  %v1020_v32 = vld [vmem:[#allocation5 + $0x8] ss:$24 sps:$4 sm:$0xff]  }
  0x33   :  { %358 = vmatpush1.bf16.msra.mxu0 %v989_v11  ;;  %401 = vmatpush1.bf16.msra.mxu1 %v990_v12  ;;  %v1019_v31 = vld [vmem:[#allocation5] ss:$24 sps:$4 sm:$0xff]   ;;  %v1024_v33 = vld [vmem:[#allocation5 + $0x164] ss:$24 sps:$4 sm:$0xff]   ;;  %v1027_v36 = vld [vmem:[#allocation5 + $0x134] ss:$24 sps:$4 sm:$0xff]  }
  0x34   :  { %359 = vmatprep.subr.bf16.mxu0 %v991_v13  ;;  %402 = vmatprep.subr.bf16.mxu1 %v993_v14  ;;  %v1022_v35 = vld [vmem:[#allocation5 + $0x160] ss:$24 sps:$4 sm:$0xff]   ;;  %v1025_v37 = vld [vmem:[#allocation5 + $0x130] ss:$24 sps:$4 sm:$0xff]   ;;  %v1030_v38 = vld [vmem:[#allocation5 + $0x104] ss:$24 sps:$4 sm:$0xff]  }
  0x35   :  { %v1028_v39 = vld [vmem:[#allocation5 + $0x100] ss:$24 sps:$4 sm:$0xff]   ;;  %v1033_v40 = vld [vmem:[#allocation5 + $0xd4] ss:$24 sps:$4 sm:$0xff]   ;;  %v1031_v41 = vld [vmem:[#allocation5 + $0xd0] ss:$24 sps:$4 sm:$0xff]  }
  0x36   :  { %v1036_v42 = vld [vmem:[#allocation5 + $0xa4] ss:$24 sps:$4 sm:$0xff]   ;;  %v1034_v43 = vld [vmem:[#allocation5 + $0xa0] ss:$24 sps:$4 sm:$0xff]   ;;  %v1039_v44 = vld [vmem:[#allocation5 + $0x74] ss:$24 sps:$4 sm:$0xff]  }
  0x37   :  { %360 = vmatpush1.bf16.msra.mxu0 %v995_v15  ;;  %403 = vmatpush1.bf16.msra.mxu1 %v996_v16  ;;  %v1037_v45 = vld [vmem:[#allocation5 + $0x70] ss:$24 sps:$4 sm:$0xff]   ;;  %v1042_v46 = vld [vmem:[#allocation5 + $0x44] ss:$24 sps:$4 sm:$0xff]   ;;  %v1040_v47 = vld [vmem:[#allocation5 + $0x40] ss:$24 sps:$4 sm:$0xff]  }
  0x38   :  { %361 = vmatprep.subr.bf16.mxu0 %v997_v17  ;;  %404 = vmatprep.subr.bf16.mxu1 %v999_v18  ;;  %v1045_v48 = vld [vmem:[#allocation5 + $0x14] ss:$24 sps:$4 sm:$0xff]   ;;  %v1043_v49 = vld [vmem:[#allocation5 + $0x10] ss:$24 sps:$4 sm:$0xff]   ;;  %v1046_v50 = vld [vmem:[#allocation7 + $0xb8] sm:$0xff]   ;;  %v1188_v51 = vmov 0.0  }
  0x39   :  { %v1047_v52 = vld [vmem:[#allocation7 + $0x78] sm:$0xff]   ;;  %v1049_v54 = vld [vmem:[#allocation7 + $0xb0] sm:$0xff]   ;;  %v1052_v57 = vld [vmem:[#allocation7 + $0xa8] sm:$0xff]   ;;  %vm1189_vm0 = vmmov 0   ;;  %s1190_s0 = smov [#allocation8]  }
  0x3a   :  { %v1048_v53 = vld [vmem:[#allocation7 + $0x38] sm:$0xff]   ;;  %v1050_v55 = vld [vmem:[#allocation7 + $0x70] sm:$0xff]   ;;  %v1053_v58 = vld [vmem:[#allocation7 + $0x68] sm:$0xff]   ;;  %s816_s2 = sshll.u32 %s1190_s0, 4  ;;  %s817_s2 = int_to_ptr.vmem [resolvable:$true] %s816_s2 }
  0x3b   :  { %362 = vmatpush1.bf16.msra.mxu0 %v1001_v19  ;;  %405 = vmatpush1.bf16.msra.mxu1 %v1002_v20  ;;  %v1051_v56 = vld [vmem:[#allocation7 + $0x30] sm:$0xff]   ;;  %v1054_v59 = vld [vmem:[#allocation7 + $0x28] sm:$0xff]   ;;  %v1055_v60 = vld [vmem:[#allocation7 + $0xa0] sm:$0xff]   ;;  %s1154_s30 = scalar_lea.vmem %s817_s2, 128  ;;  %p1159_p2 = scmp.lt.s32.totalorder %s817_s2, %s817_s2 }
  0x3c   :  { %363 = vmatprep.subr.bf16.mxu0 %v1003_v21  ;;  %406 = vmatprep.subr.bf16.mxu1 %v1005_v22  ;;  %v1056_v61 = vld [vmem:[#allocation7 + $0x60] sm:$0xff]   ;;  %v1058_v63 = vld [vmem:[#allocation7 + $0x98] sm:$0xff]   ;;  %v1061_v2 = vld [vmem:[#allocation7 + $0x90] sm:$0xff]   ;;  %p1155_p1 = scmp.ne.s32.totalorder %s817_s2, %s1154_s30  ;;  %p1160_p3 = scmp.lt.s32.totalorder %s1154_s30, %s1154_s30 }
  0x3d   :  { %v1057_v62 = vld [vmem:[#allocation7 + $0x20] sm:$0xff]   ;;  %v1060_v1 = vld [vmem:[#allocation7 + $0x18] sm:$0xff]   ;;  %v1062_v3 = vld [vmem:[#allocation7 + $0x50] sm:$0xff]  }
  0x3e   :  { %v1063_v4 = vld [vmem:[#allocation7 + $0x10] sm:$0xff]   ;;  %v1064_v5 = vld [vmem:[#allocation7 + $0x88] sm:$0xff]   ;;  %v1067_v8 = vld [vmem:[#allocation7 + $0x80] sm:$0xff]   ;;  %p1161_p4 = por %p1160_p3, %p1159_p2 }
  0x3f   :  { %364 = vmatpush1.bf16.msra.mxu0 %v1007_v23  ;;  %407 = vmatpush1.bf16.msra.mxu1 %v1008_v24  ;;  %v1065_v6 = vld [vmem:[#allocation7 + $0x48] sm:$0xff]   ;;  %v1068_v9 = vld [vmem:[#allocation7 + $0x40] sm:$0xff]  }
  0x40   :  { %365 = vmatprep.subr.bf16.mxu0 %v1009_v25  ;;  %408 = vmatprep.subr.bf16.mxu1 %v1011_v26  ;;  %v1066_v7 = vld [vmem:[#allocation7 + $0x8] sm:$0xff]   ;;  %v1069_v10 = vld [vmem:[#allocation7] sm:$0xff]   ;;  %p1162_p5 = pnand %p1161_p4, %p1155_p1 }
  0x43   :  { %366 = vmatpush1.bf16.msra.mxu0 %v1013_v27  ;;  %409 = vmatpush1.bf16.msra.mxu1 %v1014_v28 }
  0x44   :  { %367 = vmatprep.subr.bf16.mxu0 %v1015_v29  ;;  %410 = vmatprep.subr.bf16.mxu1 %v1017_v30 }
  0x47   :  { %368 = vmatpush1.bf16.msra.mxu0 %v1019_v31  ;;  %411 = vmatpush1.bf16.msra.mxu1 %v1020_v32 }
  0x48   :  { %439 = vmatprep.subr.bf16.mxu0 %v1024_v33  ;;  %911 = vmatprep.subr.bf16.mxu1 %v1047_v52 }
  0x4a   :  { %386 = vmatmul.mubr.bf16.vlgmr.msra.gmra.mxu0 %v1021_v34  ;;  %429 = vmatmul.mubr.bf16.vlgmr.msra.gmra.mxu1 %v1021_v34 }
  0x4b   :  { %440 = vmatpush1.bf16.msra.mxu0 %v1022_v35  ;;  %471 = vmatprep.mubr.bf16.mxu0 %v1187_v0  ;;  %v1059_v0 = vld [vmem:[#allocation7 + $0x58] sm:$0xff]  }
  0x4c   :  { %441 = vmatprep.subr.bf16.mxu0 %v1027_v36  ;;  %912 = vmatpush3.bf16.msra.mxu1 %v1048_v53 }
  0x4d   :  { %913 = vmatprep.subr.bf16.mxu1 %v1050_v55 }
  0x4f   :  { %442 = vmatpush1.bf16.msra.mxu0 %v1025_v37 }
  0x50   :  { %443 = vmatprep.subr.bf16.mxu0 %v1030_v38  ;;  %914 = vmatpush3.bf16.msra.mxu1 %v1051_v56 }
  0x51   :  { %915 = vmatprep.subr.bf16.mxu1 %v1053_v58 }
  0x53   :  { %444 = vmatpush1.bf16.msra.mxu0 %v1028_v39 }
  0x54   :  { %445 = vmatprep.subr.bf16.mxu0 %v1033_v40  ;;  %916 = vmatpush3.bf16.msra.mxu1 %v1054_v59 }
  0x55   :  { %917 = vmatprep.subr.bf16.mxu1 %v1056_v61 }
  0x57   :  { %446 = vmatpush1.bf16.msra.mxu0 %v1031_v41 }
  0x58   :  { %447 = vmatprep.subr.bf16.mxu0 %v1036_v42  ;;  %918 = vmatpush3.bf16.msra.mxu1 %v1057_v62 }
  0x59   :  { %919 = vmatprep.subr.bf16.mxu1 %v1059_v0 }
  0x5b   :  { %448 = vmatpush1.bf16.msra.mxu0 %v1034_v43 }
  0x5c   :  { %449 = vmatprep.subr.bf16.mxu0 %v1039_v44  ;;  %920 = vmatpush3.bf16.msra.mxu1 %v1060_v1 }
  0x5d   :  { %921 = vmatprep.subr.bf16.mxu1 %v1062_v3 }
  0x5f   :  { %450 = vmatpush1.bf16.msra.mxu0 %v1037_v45 }
  0x60   :  { %451 = vmatprep.subr.bf16.mxu0 %v1042_v46  ;;  %922 = vmatpush3.bf16.msra.mxu1 %v1063_v4 }
  0x61   :  { %923 = vmatprep.subr.bf16.mxu1 %v1065_v6 }
  0x63   :  { %452 = vmatpush1.bf16.msra.mxu0 %v1040_v47 }
  0x64   :  { %453 = vmatprep.subr.bf16.mxu0 %v1045_v48  ;;  %924 = vmatpush3.bf16.msra.mxu1 %v1066_v7 }
  0x65   :  { %925 = vmatprep.subr.bf16.mxu1 %v1068_v9 }
  0x67   :  { %454 = vmatpush1.bf16.msra.mxu0 %v1043_v49 }
  0x68   :  { %942 = vmatprep.subr.bf16.mxu0 %v1188_v51  ;;  %926 = vmatpush3.bf16.msra.mxu1 %v1069_v10 }
  0x6a   :  { %472 = vmatmul.mubr.bf16.vlgmr.msra.gmra.mxu0 %v1021_v34 }
  0x6b   :  { %943 = vmatpush3.bf16.msra.mxu0 %v1046_v50  ;;  %958 = vmatprep.mubr.msk.bf16.mxu0 %vm1189_vm0, %v1188_v51 }
  0x6c   :  { %944 = vmatprep.subr.bf16.mxu0 %v1188_v51 }
  0x6f   :  { %945 = vmatpush3.bf16.msra.mxu0 %v1049_v54 }
  0x70   :  { %946 = vmatprep.subr.bf16.mxu0 %v1188_v51 }
  0x73   :  { %947 = vmatpush3.bf16.msra.mxu0 %v1052_v57 }
  0x74   :  { %948 = vmatprep.subr.bf16.mxu0 %v1188_v51 }
  0x77   :  { %949 = vmatpush3.bf16.msra.mxu0 %v1055_v60 }
  0x78   :  { %950 = vmatprep.subr.bf16.mxu0 %v1188_v51 }
  0x7b   :  { %951 = vmatpush3.bf16.msra.mxu0 %v1058_v63 }
  0x7c   :  { %952 = vmatprep.subr.bf16.mxu0 %v1188_v51 }
  0x7f   :  { %953 = vmatpush3.bf16.msra.mxu0 %v1061_v2 }
  0x80   :  { %954 = vmatprep.subr.bf16.mxu0 %v1188_v51 }
  0x83   :  { %955 = vmatpush3.bf16.msra.mxu0 %v1064_v5 }
  0x84   :  { %956 = vmatprep.subr.bf16.mxu0 %v1188_v51 }
  0x87   :  { %957 = vmatpush3.bf16.msra.mxu0 %v1067_v8 }
 0x10a   :  { %v387_v11 = vpop.f32.mrf.mxu0  ;;  %v430_v12 = vpop.f32.mrf.mxu1 }
 0x10b   :  { %v482_v13 = vsub.f32 0.0, %v387_v11  ;;  %v484_v14 = vsub.f32 0.0, %v430_v12 }
 0x10c   :  { %v389_v15 = vpop.f32.mrf.mxu0  ;;  %v432_v16 = vpop.f32.mrf.mxu1 }
 0x10d   :  { %v488_v17 = vmul.f32 1.442695, %v482_v13  ;;  %v492_v18 = vmul.f32 1.442695, %v484_v14  ;;  %v483_v19 = vsub.f32 0.0, %v389_v15 }
 0x10e   :  { %v391_v20 = vpop.f32.mrf.mxu0  ;;  %v434_v21 = vpop.f32.mrf.mxu1 }
 0x10f   :  { %1070 = vpow2.f32 %v488_v17  ;;  %v490_v22 = vmul.f32 1.442695, %v483_v19  ;;  %v485_v23 = vsub.f32 0.0, %v391_v20  ;;  %v487_v24 = vsub.f32 0.0, %v434_v21 }
 0x110   :  { %1072 = vpow2.f32 %v492_v18  ;;  %v393_v25 = vpop.f32.mrf.mxu0  ;;  %v436_v57 = vpop.f32.mrf.mxu1 }
 0x111   :  { %1074 = vpow2.f32 %v490_v22  ;;  %v494_v26 = vmul.f32 1.442695, %v485_v23  ;;  %v498_v27 = vmul.f32 1.442695, %v487_v24  ;;  %v486_v28 = vsub.f32 0.0, %v393_v25 }
 0x113   :  { %1076 = vpow2.f32 %v494_v26  ;;  %v496_v29 = vmul.f32 1.442695, %v486_v28 }
 0x114   :  { %1078 = vpow2.f32 %v498_v27 }
 0x115   :  { %1080 = vpow2.f32 %v496_v29 }
 0x11c   :  { %v1071_v30 = vpop.eup %1070 }
 0x11d   :  { %v1073_v31 = vpop.eup %1072  ;;  %v500_v33 = vadd.f32 1.0, %v1071_v30 }
 0x11e   :  { %v1075_v32 = vpop.eup %1074  ;;  %v502_v34 = vadd.f32 1.0, %v1073_v31 }
 0x11f   :  { %v501_v35 = vadd.f32 1.0, %v1075_v32 }
 0x120   :  { %v1077_v36 = vpop.eup %1076  ;;  %1082 = vrcp.f32 %v502_v34 }
 0x121   :  { %v1079_v37 = vpop.eup %1078  ;;  %1084 = vrcp.f32 %v501_v35  ;;  %v503_v38 = vadd.f32 1.0, %v1077_v36 }
 0x122   :  { %v1081_v39 = vpop.eup %1080  ;;  %1086 = vrcp.f32 %v500_v33  ;;  %v505_v40 = vadd.f32 1.0, %v1079_v37 }
 0x123   :  { %1088 = vrcp.f32 %v503_v38  ;;  %v504_v41 = vadd.f32 1.0, %v1081_v39 }
 0x124   :  { %1090 = vrcp.f32 %v505_v40 }
 0x125   :  { %1092 = vrcp.f32 %v504_v41 }
 0x12a   :  { %v473_v42 = vpop.f32.mrf.mxu0 }
 0x12c   :  { %v475_v43 = vpop.f32.mrf.mxu0 }
 0x12d   :  { %v1083_v44 = vpop.eup %1082 }
 0x12e   :  { %v1085_v45 = vpop.eup %1084  ;;  %v477_v47 = vpop.f32.mrf.mxu0  ;;  %v514_v49 = vmul.f32 %v1083_v44, %v430_v12 }
 0x12f   :  { %v1087_v46 = vpop.eup %1086  ;;  %v513_v51 = vmul.f32 %v1085_v45, %v389_v15 }
 0x130   :  { %v1089_v48 = vpop.eup %1088  ;;  %v512_v54 = vmul.f32 %v1087_v46, %v387_v11  ;;  %v479_v58 = vpop.f32.mrf.mxu0  ;;  %v520_v60 = vmul.f32 %v514_v49, %v475_v43 }
 0x131   :  { %v1091_v50 = vpop.eup %1090  ;;  %v515_v52 = vmul.f32 %v1089_v48, %v391_v20  ;;  %v519_v62 = vmul.f32 %v513_v51, %v473_v42 }
 0x132   :  { %v1093_v53 = vpop.eup %1092  ;;  %v517_v55 = vmul.f32 %v1091_v50, %v434_v21  ;;  %v518_v0 = vmul.f32 %v512_v54, %v432_v16 }
 0x133   :  { %v516_v56 = vmul.f32 %v1093_v53, %v393_v25  ;;  %v521_v59 = vmul.f32 %v515_v52, %v436_v57 }
 0x134   :  { %v523_v61 = vmul.f32 %v517_v55, %v479_v58 }
 0x135   :  { %v522_v63 = vmul.f32 %v516_v56, %v477_v47  ;;  %v524_v3 = vpack.c.bf16 %v521_v59, %v518_v0 }
 0x136   :  { %v526_v1 = vpack.c.bf16 %v523_v61, %v520_v60 }
 0x137   :  { %v525_v2 = vpack.c.bf16 %v522_v63, %v519_v62 }
 0x138   :  { %959 = vmatmul.mubr.bf16.vlgmr.msra.gmra.mxu0 %v526_v1 }
 0x139   :  { %751 = vmatprep.mubr.bf16.mxu1 %v525_v2 }
 0x13a   :  { %752 = vmatmul.mubr.bf16.vlgmr.msra.gmra.mxu1 %v524_v3 }
 0x1f8   :  { %v794_v4 = vpop.f32.mrf.mxu0 }
 0x1fa   :  { %v960_v5 = vpop.f32.mrf.mxu0  ;;  %v927_v6 = vpop.f32.mrf.mxu1 }
 0x1fc   :  { %v797_v7 = vpop.f32.mrf.mxu0  ;;  %v928_v8 = vpop.f32.mrf.mxu1 }
 0x1fd   :  { %v929_v11 = vadd.f32 %v928_v8, %v927_v6 }
 0x1fe   :  { %v961_v9 = vpop.f32.mrf.mxu0  ;;  %v930_v10 = vpop.f32.mrf.mxu1 }
 0x1ff   :  { %v795_v14 = vadd.f32 %v929_v11, %v794_v4 }
 0x200   :  { %v931_v12 = vpop.f32.mrf.mxu1 }
 0x201   :  { %v932_v13 = vadd.f32 %v931_v12, %v930_v10 }
 0x203   :  { %v798_v15 = vadd.f32 %v932_v13, %v797_v7 }
 0x205   :  { %v909_v16 = vpack.c.bf16 %v798_v15, %v795_v14 }
 0x207   :  { %910 = vst [vmem:[#allocation8] sm:$0xff] %v909_v16  }
 0x208   :  { %1165 = shalt.err (!%p1162_p5)
}
 0x209   :  { %822 = dma.vmem_to_hbm [thread:$0]  %s817_s2, 128, %s1238_s3, [#allocation4], %s1184_s22, %s1184_s22, %s1185_s23  }
 0x20a   :  { %1178 = dma.done.wait [#allocation4], 128  }
 0x20b   :  { %1179 = vsyncadd [#allocation4], 4294967168 }
 0x20c   :  { %826 = vsyncpa [#allocation3], 1 }
 0x20d   :  { %827 = vsyncpa [#allocation6], 1 }
 0x20e   :  { %828 = vsyncpa [#allocation4], 1 }

</bundles_post_ra>
